<compile_context>
chip_gen: v5e
topology: v5e:2x2
jax: 0.10.0
libtpu: 0.0.40
codegen_flags: <defaults>
</compile_context>

<pallas_src>
import jax
import jax.numpy as jnp
from jax.experimental import pallas as pl
from jax.experimental.pallas import tpu as pltpu


def _round_up(x, m):
    return ((x + m - 1) // m) * m


def _vmem_budget_bytes():
    """Usable VMEM budget: 3/4 of physical capacity (96 MiB on v5e/v6e, 48 MiB on v7x)."""
    cap = 64 * 1024 * 1024  # conservative fallback (v7x physical)
    try:
        info = pltpu.get_tpu_info()
        cap = int(getattr(info, "vmem_capacity_bytes", cap))
    except Exception:
        pass
    return (cap * 3) // 4


def _vmem_estimate(tile_m, tile_n, tile_k, in_itemsize, out_itemsize):
    return (2 * (tile_m * tile_k + tile_k * tile_n) * in_itemsize  # double-buffered x, W^T
            + tile_m * tile_n * 4                                  # f32 accumulator
            + 2 * tile_m * tile_n * out_itemsize                   # double-buffered output
            + 2 * tile_n * 4)                                      # bias


# ----------------------------------------------------------------------------
# Kernel
# ----------------------------------------------------------------------------
def hidden_layer_kernel(x_ref, wt_ref, b_ref, o_ref, acc_ref):
    # x_ref:   (tile_m, tile_k)   activation tile (compute dtype)
    # wt_ref:  (tile_k, tile_n)   pre-transposed weight tile, (in, out) layout
    # b_ref:   (1, tile_n)        f32 bias row
    # o_ref:   (tile_m, tile_n)   output tile
    # acc_ref: (tile_m, tile_n)   f32 accumulator, resident across the K axis
    k = pl.program_id(2)

    @pl.when(k == 0)
    def _():
        # Fold bias into accumulator init (saves a zero-fill + epilogue add).
        acc_ref[...] = jnp.broadcast_to(b_ref[...], acc_ref.shape)

    acc_ref[...] += jnp.dot(x_ref[...], wt_ref[...],
                            preferred_element_type=jnp.float32)

    @pl.when(k == pl.num_programs(2) - 1)
    def _():
        o_ref[...] = jnp.maximum(acc_ref[...], 0.0).astype(o_ref.dtype)


# ----------------------------------------------------------------------------
# One-time parameter preparation (hoisted out of the per-call path)
# ----------------------------------------------------------------------------
def prepare_params(w, b, *, compute_dtype=None):
    """Cast, pad (lane-dense) and pre-transpose the static weight once.

    w: (width, width) PyTorch nn.Linear layout (out_features, in_features)
    b: (width,)
    Returns (wt_p, b_p, width, compute_dtype) with wt_p of shape
    (width_p, width_p) in (in, out) layout and b_p of shape (1, width_p), f32.
    """
    out_f, in_f = w.shape
    assert out_f == in_f, "Hidden_Layer is a square linear layer"
    width = in_f
    if compute_dtype is None:
        # bf16 is MXU-native on v5e/v6e/v7x; keep small widths in f32.
        compute_dtype = jnp.bfloat16 if width >= 256 else jnp.dtype(w.dtype)

    width_p = _round_up(width, 128)
    wt = jnp.asarray(w).astype(compute_dtype).T            # (in, out)
    b_f32 = jnp.asarray(b).astype(jnp.float32)
    if width_p != width:
        pad = width_p - width
        wt = jnp.pad(wt, ((0, pad), (0, pad)))
        b_f32 = jnp.pad(b_f32, (0, pad))
    return wt, b_f32.reshape(1, width_p), width, compute_dtype


# ----------------------------------------------------------------------------
# Tile selection (generation-aware via VMEM budget)
# ----------------------------------------------------------------------------
def _pick_tiles(M, width_p, in_itemsize, out_itemsize, vmem_budget,
                tile_m=None, tile_n=None, tile_k=None):
    min_m = 16 if in_itemsize < 4 else 8

    # tile_m: full-batch tile for small M; else 128-multiple minimizing padding.
    if tile_m is None:
        if M <= 128:
            tile_m = max(_round_up(M, min_m), min_m)
        else:
            best = None
            for cand in (1024, 512, 256, 128):
                waste = _round_up(M, cand) - M
                if (best is None or waste < best[0]
                        or (waste == best[0] and cand > best[1])):
                    best = (waste, cand)
            tile_m = best[1]
    M_p = _round_up(M, tile_m)
    grid_m = M_p // tile_m

    # tile_n: lane-dense divisor of width_p; bigger cap on 128 MiB parts.
    if tile_n is None:
        n_cap = 1024 if vmem_budget >= 80 * 1024 * 1024 else 512
        tile_n = 128
        for cand in (1024, 512, 256, 128):
            if cand <= n_cap and width_p % cand == 0:
                tile_n = cand
                break
        # Keep >= 2 blocks along the parallel axes (v7x has 2 TensorCores).
        while (grid_m * (width_p // tile_n) < 2 and tile_n > 128
               and width_p % (tile_n // 2) == 0):
            tile_n //= 2
    assert width_p % tile_n == 0
    grid_n = width_p // tile_n

    # tile_k: as large as the VMEM budget allows (fewer overhead-dominated K steps,
    # less accumulator read-modify-write traffic).
    if tile_k is None:
        candidates = sorted({c for c in (width_p, 1024, 512, 256, 128)
                             if c <= width_p and width_p % c == 0}, reverse=True)
        tile_k = candidates[-1]
        for cand in candidates:
            if _vmem_estimate(tile_m, tile_n, cand, in_itemsize, out_itemsize) <= vmem_budget:
                tile_k = cand
                break
    assert width_p % tile_k == 0
    grid_k = width_p // tile_k

    return tile_m, tile_n, tile_k, M_p, (grid_m, grid_n, grid_k)


# ----------------------------------------------------------------------------
# Per-call apply (only activations are padded/cast here)
# ----------------------------------------------------------------------------
def hidden_layer_apply(x, wt_p, b_p, *, compute_dtype, width,
                       tile_m=None, tile_n=None, tile_k=None):
    M, in_f = x.shape
    assert in_f == width
    width_p = wt_p.shape[0]
    out_dtype = x.dtype

    in_itemsize = jnp.dtype(compute_dtype).itemsize
    out_itemsize = jnp.dtype(out_dtype).itemsize
    budget = _vmem_budget_bytes()

    tile_m, tile_n, tile_k, M_p, grid = _pick_tiles(
        M, width_p, in_itemsize, out_itemsize, budget, tile_m, tile_n, tile_k)

    x_c = x.astype(compute_dtype) if x.dtype != jnp.dtype(compute_dtype) else x
    if (M_p, width_p) != (M, width):
        x_c = jnp.pad(x_c, ((0, M_p - M), (0, width_p - width)))

    vmem_est = _vmem_estimate(tile_m, tile_n, tile_k, in_itemsize, out_itemsize)
    vmem_limit = int(min(budget, max(vmem_est * 3 // 2, 32 * 1024 * 1024)))

    out_p = pl.pallas_call(
        hidden_layer_kernel,
        out_shape=jax.ShapeDtypeStruct((M_p, width_p), out_dtype),
        grid_spec=pltpu.PrefetchScalarGridSpec(
            num_scalar_prefetch=0,
            grid=grid,
            in_specs=[
                pl.BlockSpec((tile_m, tile_k), lambda i, j, k: (i, k)),   # x
                pl.BlockSpec((tile_k, tile_n), lambda i, j, k: (k, j)),   # W^T (in,out)
                pl.BlockSpec((1, tile_n), lambda i, j, k: (0, j)),        # bias
            ],
            out_specs=pl.BlockSpec((tile_m, tile_n), lambda i, j, k: (i, j)),
            scratch_shapes=[pltpu.VMEM((tile_m, tile_n), jnp.float32)],
        ),
        compiler_params=pltpu.CompilerParams(
            dimension_semantics=("parallel", "parallel", "arbitrary"),
            vmem_limit_bytes=vmem_limit,
        ),
    )(x_c, wt_p, b_p)

    if (M_p, width_p) != (M, width):
        out_p = out_p[:M, :width]
    return out_p


def make_hidden_layer(w, b, *, compute_dtype=None,
                      tile_m=None, tile_n=None, tile_k=None):
    """One-time weight prep; returns a callable x -> ReLU(x @ w.T + b)."""
    wt_p, b_p, width, cdt = prepare_params(w, b, compute_dtype=compute_dtype)

    def apply_fn(x):
        return hidden_layer_apply(x, wt_p, b_p, compute_dtype=cdt, width=width,
                                  tile_m=tile_m, tile_n=tile_n, tile_k=tile_k)

    return apply_fn


def hidden_layer(x, w, b, **kwargs):
    """Convenience one-shot wrapper (pads/casts W on every call; prefer make_hidden_layer)."""
    return make_hidden_layer(w, b, **kwargs)(x)


if __name__ == "__main__":
    width = 32
    batch = 8

    key = jax.random.PRNGKey(0)
    kx, kw, kb = jax.random.split(key, 3)

    # Deterministic init (matching nn.Linear's uniform(-1/sqrt(in), 1/sqrt(in)))
    bound = 1.0 / (width ** 0.5)
    x = jax.random.normal(kx, (batch, width), dtype=jnp.float32)
    w = jax.random.uniform(kw, (width, width), minval=-bound, maxval=bound,
                           dtype=jnp.float32)
    b = jax.random.uniform(kb, (width,), minval=-bound, maxval=bound,
                           dtype=jnp.float32)

    layer = make_hidden_layer(w, b)   # width < 256 -> f32 compute path
    out = jax.block_until_ready(layer(x))

    # Pure-JAX reference check
    ref = jnp.maximum(x @ w.T + b, 0.0)
    assert out.shape == (batch, width)
    assert jnp.allclose(out, ref, atol=1e-5, rtol=1e-5)

    print("KERNEL_OK")
</pallas_src>

<mosaic_0001>
module attributes {stable_mosaic.version = 11 : i64} {
  func.func @hidden_layer_kernel(%arg0: i32, %arg1: i32, %arg2: i32, %arg3: memref<8x128xf32, #tpu.memory_space<vmem>>, %arg4: memref<128x128xf32, #tpu.memory_space<vmem>>, %arg5: memref<1x128xf32, #tpu.memory_space<vmem>>, %arg6: memref<8x128xf32, #tpu.memory_space<vmem>>, %arg7: memref<8x128xf32, #tpu.memory_space<vmem>>) attributes {dimension_semantics = [#tpu.dimension_semantics<parallel>, #tpu.dimension_semantics<parallel>, #tpu.dimension_semantics<arbitrary>], iteration_bounds = array<i64: 1, 1, 1>, scalar_prefetch = 0 : i64, scratch_operands = 1 : i64, tpu.core_type = #tpu.core_type<tc>, window_params = [{transform_indices = @transform_0, window_bounds = array<i64: 8, 128>}, {transform_indices = @transform_1, window_bounds = array<i64: 128, 128>}, {transform_indices = @transform_2, window_bounds = array<i64: 1, 128>}, {transform_indices = @transform_3, window_bounds = array<i64: 8, 128>}]} {
    %c0_i32 = arith.constant 0 : i32
    %0 = arith.cmpi eq, %arg2, %c0_i32 : i32
    %1 = arith.extui %0 : i1 to i32
    %c0_i32_0 = arith.constant 0 : i32
    %2 = arith.cmpi ne, %1, %c0_i32_0 : i32
    scf.if %2 {
      %c0_10 = arith.constant 0 : index
      %c0_11 = arith.constant 0 : index
      %12 = vector.load %arg5[%c0_10, %c0_11] : memref<1x128xf32, #tpu.memory_space<vmem>>, vector<1x128xf32>
      %13 = vector.shape_cast %12 : vector<1x128xf32> to vector<1x128xf32>
      %14 = vector.broadcast %13 : vector<1x128xf32> to vector<8x128xf32>
      %c0_12 = arith.constant 0 : index
      %c0_13 = arith.constant 0 : index
      %15 = vector.load %arg7[%c0_12, %c0_13] : memref<8x128xf32, #tpu.memory_space<vmem>>, vector<8x128xf32>
      tpu.vector_store %arg7[%c0_12, %c0_13], %14 {strides = array<i32>} : memref<8x128xf32, #tpu.memory_space<vmem>>, vector<8x128xf32>,
    } else {
    }
    %c0 = arith.constant 0 : index
    %c0_1 = arith.constant 0 : index
    %3 = vector.load %arg7[%c0, %c0_1] : memref<8x128xf32, #tpu.memory_space<vmem>>, vector<8x128xf32>
    %c0_2 = arith.constant 0 : index
    %c0_3 = arith.constant 0 : index
    %4 = vector.load %arg3[%c0_2, %c0_3] : memref<8x128xf32, #tpu.memory_space<vmem>>, vector<8x128xf32>
    %c0_4 = arith.constant 0 : index
    %c0_5 = arith.constant 0 : index
    %5 = vector.load %arg4[%c0_4, %c0_5] : memref<128x128xf32, #tpu.memory_space<vmem>>, vector<128x128xf32>
    %cst = arith.constant dense<0.000000e+00> : vector<8x128xf32>
    %6 = tpu.matmul %4, %5, %cst {dimension_numbers = #tpu.dot_dimension_numbers<[1], [0], [0], [1], [0, 0, 1, 1], [], []>} : vector<8x128xf32>, vector<128x128xf32>, vector<8x128xf32> -> vector<8x128xf32>
    %7 = arith.addf %3, %6 : vector<8x128xf32>
    %c0_6 = arith.constant 0 : index
    %c0_7 = arith.constant 0 : index
    %8 = vector.load %arg7[%c0_6, %c0_7] : memref<8x128xf32, #tpu.memory_space<vmem>>, vector<8x128xf32>
    tpu.vector_store %arg7[%c0_6, %c0_7], %7 {strides = array<i32>} : memref<8x128xf32, #tpu.memory_space<vmem>>, vector<8x128xf32>,
    %c0_i32_8 = arith.constant 0 : i32
    %9 = arith.cmpi eq, %arg2, %c0_i32_8 : i32
    %10 = arith.extui %9 : i1 to i32
    %c0_i32_9 = arith.constant 0 : i32
    %11 = arith.cmpi ne, %10, %c0_i32_9 : i32
    scf.if %11 {
      %c0_10 = arith.constant 0 : index
      %c0_11 = arith.constant 0 : index
      %12 = vector.load %arg7[%c0_10, %c0_11] : memref<8x128xf32, #tpu.memory_space<vmem>>, vector<8x128xf32>
      %cst_12 = arith.constant 0.000000e+00 : f32
      %13 = vector.broadcast %cst_12 : f32 to vector<8x128xf32>
      %14 = arith.maximumf %12, %13 : vector<8x128xf32>
      %c0_13 = arith.constant 0 : index
      %c0_14 = arith.constant 0 : index
      %15 = vector.load %arg6[%c0_13, %c0_14] : memref<8x128xf32, #tpu.memory_space<vmem>>, vector<8x128xf32>
      tpu.vector_store %arg6[%c0_13, %c0_14], %14 {strides = array<i32>} : memref<8x128xf32, #tpu.memory_space<vmem>>, vector<8x128xf32>,
    } else {
    }
    return
  }
  func.func @transform_0(%arg0: i32, %arg1: i32, %arg2: i32) -> (i32, i32) {
    %c0_i32 = arith.constant 0 : i32
    return %arg0, %arg2 : i32, i32
  }
  func.func @transform_1(%arg0: i32, %arg1: i32, %arg2: i32) -> (i32, i32) {
    %c0_i32 = arith.constant 0 : i32
    return %arg2, %arg1 : i32, i32
  }
  func.func @transform_2(%arg0: i32, %arg1: i32, %arg2: i32) -> (i32, i32) {
    %c0_i32 = arith.constant 0 : i32
    %c0_i32_0 = arith.constant 0 : i32
    return %c0_i32, %arg1 : i32, i32
  }
  func.func @transform_3(%arg0: i32, %arg1: i32, %arg2: i32) -> (i32, i32) {
    %c0_i32 = arith.constant 0 : i32
    return %arg0, %arg1 : i32, i32
  }
}

</mosaic_0001>

<bundles_post_ra>
// kernel: tpu_custom_call.1
= control target key start
LH: loop header
LB: loop body
LE: loop exit
PB: predicated region body
PF: predicated region fallthrough
CT: control target
= control target key end

     0   :  { %8 = vsyncpa [#allocation4], 0  ;;  %s239_s0 = inlined_call_operand.hbm [shape: f32[8,128], index: 0, kind: input, shape index: {}]   ;;  %s240_s1 = inlined_call_operand.hbm [shape: f32[128,128], index: 1, kind: input, shape index: {}]   ;;  %s241_s2 = inlined_call_operand.vmem [shape: f32[1,128], index: 2, kind: input, shape index: {}]   ;;  %s242_s3 = inlined_call_operand.hbm [shape: f32[8,128], index: 3, kind: output, shape index: {}]  }
   0x1   :  { %9 = vsyncpa [#allocation7], 0 }
   0x2   :  { %10 = vsyncpa [#allocation5], 0  ;;  %s16_s14 = sshll.u32 %s239_s0, 4  ;;  %s202_s15 = smov [#allocation3]   ;;  %s17_s14 = int_to_ptr.hbm [resolvable:$true] %s16_s14 }
   0x3   :  { %s18_s16 = sshll.u32 %s202_s15, 4  ;;  %s26_s19 = sshll.u32 %s240_s1, 4  ;;  %s19_s16 = int_to_ptr.vmem [resolvable:$true] %s18_s16  ;;  %s27_s19 = int_to_ptr.hbm [resolvable:$true] %s26_s19 }
   0x4   :  { %21 = dma.hbm_to_vmem [thread:$0]  %s17_s14, 128, %s19_s16, [#allocation4]  }
   0x5   :  { %s203_s20 = smov [#allocation6]   ;;  %s204_s22 = smov 128  }
   0x6   :  { %s28_s21 = sshll.u32 %s203_s20, 4  ;;  %s205_s23 = smov 8   ;;  %s29_s21 = int_to_ptr.vmem [resolvable:$true] %s28_s21 }
   0x7   :  { %34 = dma.hbm_to_vmem [thread:$0]  %s27_s19, 2048, %s29_s21, [#allocation7], %s204_s22, %s204_s22, %s205_s23  }
   0x8   :  { %196 = dma.done.wait [#allocation4], 128  }
   0x9   :  { %197 = vsyncadd [#allocation4], 4294967168 }
   0xa   :  { %198 = dma.done.wait [#allocation7], 2048  }
   0xb   :  { %199 = vsyncadd [#allocation7], 4294965248  ;;  %v71_v0 = vld [vmem:[#allocation6 + $0x78] sm:$0xff]  ;;  %v70_v1 = vld [vmem:[#allocation6 + $0x70] sm:$0xff]  ;;  %s206_s24 = smov [#allocation8]   ;;  %s107_s28 = sshll.u32 %s242_s3, 4  ;;  %s108_s28 = int_to_ptr.hbm [resolvable:$true] %s107_s28 }
   0xc   :  { %72 = vmatpush.msra.mxu0 %v71_v0  ;;  %v69_v2 = vld [vmem:[#allocation6 + $0x68] sm:$0xff]  ;;  %v68_v3 = vld [vmem:[#allocation6 + $0x60] sm:$0xff]  ;;  %v67_v4 = vld [vmem:[#allocation6 + $0x58] sm:$0xff]  ;;  %s105_s25 = sshll.u32 %s206_s24, 4  ;;  %s106_s25 = int_to_ptr.vmem [resolvable:$true] %s105_s25 }
   0xd   :  { %v66_v5 = vld [vmem:[#allocation6 + $0x50] sm:$0xff]  ;;  %v65_v6 = vld [vmem:[#allocation6 + $0x48] sm:$0xff]  ;;  %v64_v7 = vld [vmem:[#allocation6 + $0x40] sm:$0xff] }
   0xe   :  { %73 = vmatpush.msra.mxu0 %v70_v1  ;;  %v63_v8 = vld [vmem:[#allocation6 + $0x38] sm:$0xff]  ;;  %v62_v9 = vld [vmem:[#allocation6 + $0x30] sm:$0xff]  ;;  %v61_v10 = vld [vmem:[#allocation6 + $0x28] sm:$0xff] }
   0xf   :  { %v60_v11 = vld [vmem:[#allocation6 + $0x20] sm:$0xff]  ;;  %v59_v12 = vld [vmem:[#allocation6 + $0x18] sm:$0xff]  ;;  %v58_v13 = vld [vmem:[#allocation6 + $0x10] sm:$0xff] }
  0x10   :  { %74 = vmatpush.msra.mxu0 %v69_v2  ;;  %v57_v14 = vld [vmem:[#allocation6 + $0x8] sm:$0xff]  ;;  %v56_v15 = vld [vmem:[#allocation6] sm:$0xff]  ;;  %v55_v16 = vld [vmem:[#allocation3] sm:$0xff] }
  0x11   :  { %v123_v17 = vld [vmem:[%s241_s2] ss:$0 sm:$0xff] }
  0x12   :  { %75 = vmatpush.msra.mxu0 %v68_v3 }
  0x14   :  { %76 = vmatpush.msra.mxu0 %v67_v4 }
  0x16   :  { %77 = vmatpush.msra.mxu0 %v66_v5 }
  0x18   :  { %78 = vmatpush.msra.mxu0 %v65_v6 }
  0x1a   :  { %79 = vmatpush.msra.mxu0 %v64_v7 }
  0x1c   :  { %80 = vmatpush.msra.mxu0 %v63_v8 }
  0x1e   :  { %81 = vmatpush.msra.mxu0 %v62_v9 }
  0x20   :  { %82 = vmatpush.msra.mxu0 %v61_v10 }
  0x22   :  { %83 = vmatpush.msra.mxu0 %v60_v11 }
  0x24   :  { %84 = vmatpush.msra.mxu0 %v59_v12 }
  0x26   :  { %85 = vmatpush.msra.mxu0 %v58_v13 }
  0x28   :  { %86 = vmatpush.msra.mxu0 %v57_v14 }
  0x2a   :  { %87 = vmatpush.msra.mxu0 %v56_v15 }
  0x2b   :  { %88 = vmatmul.f32.vlgmr.msra.gmra.mxu0 %v55_v16 }
  0xa8   :  { %v89_v18 = vpop.f32.mrf.mxu0 }
  0xa9   :  { %v92_v19 = vadd.f32 %v123_v17, %v89_v18 }
  0xab   :  { %v98_v20 = vmax.f32 %v92_v19, 0.0 }
  0xad   :  { %99 = vst [vmem:[#allocation8] sm:$0xff] %v98_v20 }
  0xae   :  { %110 = dma.vmem_to_hbm [thread:$0]  %s106_s25, 128, %s108_s28, [#allocation5]  }
  0xaf   :  { %200 = dma.done.wait [#allocation5], 128  }
  0xb0   :  { %201 = vsyncadd [#allocation5], 4294967168 }
  0xb1   :  { %115 = vsyncpa [#allocation4], 1 }
  0xb2   :  { %116 = vsyncpa [#allocation7], 1 }
  0xb3   :  { %117 = vsyncpa [#allocation5], 1 }

</bundles_post_ra>
